<compile_context>
chip_gen: v7x
topology: tpu7x:2x2x1
jax: 0.10.0
libtpu: 0.0.40
codegen_flags: <defaults>
</compile_context>

<pallas_src>
import functools

import jax
import jax.numpy as jnp
from jax.experimental import pallas as pl
from jax.experimental.pallas import tpu as pltpu

EPS = 1e-6          # PyTorch F.pairwise_distance default eps (added to x1 - x2)
NUM_CORES = 2       # leading parallel grid axis (both v7x TensorCores; harmless on 1-TC chips)


def _round_up(x, m):
    return ((x + m - 1) // m) * m


def _contrastive_loss_kernel(o1_ref, o2_ref, lbl_ref, out_ref, *,
                             block_b, blocks_per_core, true_b, margin,
                             needs_mask):
    c = pl.program_id(0)   # core / partial-sum index (parallel)
    i = pl.program_id(1)   # batch-block index within this core (arbitrary)

    # Zero this core's resident partial-sum block on its first step.
    @pl.when(i == 0)
    def _init():
        out_ref[...] = jnp.zeros_like(out_ref)

    x1 = o1_ref[...].astype(jnp.float32)          # (block_b, D)
    x2 = o2_ref[...].astype(jnp.float32)
    lbl = lbl_ref[...].astype(jnp.float32)        # (block_b, 1)

    # F.pairwise_distance(p=2): ||x1 - x2 + eps||_2 along the feature axis.
    diff = x1 - x2 + EPS
    sq = jnp.sum(diff * diff, axis=-1, keepdims=True)   # (block_b, 1) = d^2
    dist = jnp.sqrt(sq)
    hinge = jnp.maximum(margin - dist, 0.0)
    per_row = (1.0 - lbl) * sq + lbl * hinge * hinge     # (block_b, 1)

    if needs_mask:
        # Logical (unclamped) block index; blocks past the end were clamped in
        # the index_map so they re-read valid data, but their rows must not
        # contribute. Only blocks that can contain tail rows pay for the mask.
        blk = c * blocks_per_core + i
        has_tail = (blk + 1) * block_b > true_b

        @pl.when(jnp.logical_not(has_tail))
        def _acc_full():
            out_ref[...] = out_ref[...] + jnp.sum(per_row)

        @pl.when(has_tail)
        def _acc_masked():
            row_ids = blk * block_b + jax.lax.broadcasted_iota(
                jnp.int32, per_row.shape, 0)
            masked = jnp.where(row_ids < true_b, per_row, 0.0)
            out_ref[...] = out_ref[...] + jnp.sum(masked)
    else:
        out_ref[...] = out_ref[...] + jnp.sum(per_row)


def _sublane_multiple(dtype):
    # Sub-32-bit dtypes pack along sublanes: f32 -> 8, bf16 -> 16, int8 -> 32.
    return max(8, 32 // jnp.dtype(dtype).itemsize)


def _pick_block_b(B, D, in_dtype, lbl_dtype, num_cores):
    in_is = jnp.dtype(in_dtype).itemsize
    lbl_is = jnp.dtype(lbl_dtype).itemsize
    sub = _sublane_multiple(in_dtype)

    # Double-buffered VMEM bytes per row: two (TB, D) feature tiles plus the
    # (TB, 1) label tile, whose lane dim pads to 128 in VMEM.
    per_row_bytes = 2 * (2 * D * in_is + 128 * lbl_is)

    # ~12 MiB double-buffered footprint fits every generation's scoped VMEM
    # (v5e 16 MiB default, v6e/v7x 32 MiB) with headroom; vmem_limit_bytes is
    # raised explicitly anyway.
    budget_bytes = 12 * 1024 * 1024
    tb = budget_bytes // max(per_row_bytes, 1)
    tb = max(sub, min(8192, (tb // sub) * sub))

    # No point exceeding the rows one core actually has to process.
    rows_per_core = pl.cdiv(B, num_cores)
    tb = min(tb, _round_up(rows_per_core, sub))
    return max(tb, sub)


def contrastive_loss(output1, output2, label, *, margin=5.0, block_b=None):
    """Matches ContrastiveLoss(margin).forward(output1, output2, label).

    output1, output2: (B, D). label: (B,) or (B, 1); 0 = similar, 1 = dissimilar.
    """
    B, D = output1.shape
    label = jnp.reshape(label, (B, 1))

    sub = _sublane_multiple(output1.dtype)
    if block_b is None:
        block_b = _pick_block_b(B, D, output1.dtype, label.dtype, NUM_CORES)
    block_b = max(sub, (block_b // sub) * sub)

    nblk = pl.cdiv(B, block_b)                      # valid batch blocks
    blocks_per_core = pl.cdiv(nblk, NUM_CORES)
    covered_rows = NUM_CORES * blocks_per_core * block_b
    needs_mask = covered_rows != B                  # static

    def row_block(c, i):
        # Clamp so a fully out-of-range tail block (possible when nblk is odd
        # or B % block_b != 0) re-reads the last valid block; its rows are
        # masked in-kernel via the logical row ids.
        return (jnp.minimum(c * blocks_per_core + i, nblk - 1), 0)

    kernel = functools.partial(
        _contrastive_loss_kernel,
        block_b=block_b, blocks_per_core=blocks_per_core,
        true_b=B, margin=float(margin), needs_mask=needs_mask)

    # Per-core partial sums: one (1, 8, 128) lane-dense output block per core
    # (scalar broadcast over the block), so the parallel axis never shares an
    # accumulator across cores.
    partials = pl.pallas_call(
        kernel,
        out_shape=jax.ShapeDtypeStruct((NUM_CORES, 8, 128), jnp.float32),
        grid=(NUM_CORES, blocks_per_core),
        in_specs=[
            pl.BlockSpec((block_b, D), row_block),
            pl.BlockSpec((block_b, D), row_block),
            pl.BlockSpec((block_b, 1), row_block),
        ],
        out_specs=pl.BlockSpec((1, 8, 128), lambda c, i: (c, 0, 0)),
        compiler_params=pltpu.CompilerParams(
            dimension_semantics=("parallel", "arbitrary"),
            vmem_limit_bytes=32 * 1024 * 1024),
    )(output1, output2, label)

    return jnp.sum(partials[:, 0, 0]) / B


if __name__ == "__main__":
    key = jax.random.PRNGKey(0)
    k1, k2, k3 = jax.random.split(key, 3)

    # Small shapes. B=24 with block_b=8 exercises: multi-step per-core
    # accumulation, the clamped fully-out-of-range tail block on core 1, and
    # the tail-row mask. D=128 keeps lanes dense.
    B, D = 24, 128
    output1 = jax.random.normal(k1, (B, D), dtype=jnp.float32)
    output2 = jax.random.normal(k2, (B, D), dtype=jnp.float32)
    label = jax.random.bernoulli(k3, 0.5, (B, 1)).astype(jnp.float32)

    loss_small_blocks = contrastive_loss(output1, output2, label,
                                         margin=5.0, block_b=8)
    loss_auto = contrastive_loss(output1, output2, label, margin=5.0)
    jax.block_until_ready((loss_small_blocks, loss_auto))

    # Pure-JAX reference (same semantics as the PyTorch module).
    def ref(x1, x2, lbl, margin=5.0):
        d = jnp.sqrt(jnp.sum((x1 - x2 + EPS) ** 2, axis=-1, keepdims=True))
        return jnp.mean((1.0 - lbl) * d ** 2
                        + lbl * jnp.maximum(margin - d, 0.0) ** 2)

    r = ref(output1, output2, label)
    assert jnp.allclose(loss_small_blocks, r, rtol=1e-5, atol=1e-5), (
        loss_small_blocks, r)
    assert jnp.allclose(loss_auto, r, rtol=1e-5, atol=1e-5), (loss_auto, r)
    print("KERNEL_OK")
</pallas_src>

<mosaic_0001>
module attributes {stable_mosaic.version = 11 : i64} {
  func.func @_contrastive_loss_kernel(%arg0: i32, %arg1: i32, %arg2: memref<8x128xf32, #tpu.memory_space<vmem>>, %arg3: memref<8x128xf32, #tpu.memory_space<vmem>>, %arg4: memref<8x1xf32, #tpu.memory_space<vmem>>, %arg5: memref<1x8x128xf32, #tpu.memory_space<vmem>>) attributes {dimension_semantics = [#tpu.dimension_semantics<parallel>, #tpu.dimension_semantics<arbitrary>], iteration_bounds = array<i64: 2, 2>, scalar_prefetch = 0 : i64, scratch_operands = 0 : i64, tpu.core_type = #tpu.core_type<tc>, window_params = [{transform_indices = @transform_0, window_bounds = array<i64: 8, 128>}, {transform_indices = @transform_1, window_bounds = array<i64: 8, 128>}, {transform_indices = @transform_2, window_bounds = array<i64: 8, 1>}, {transform_indices = @transform_3, window_bounds = array<i64: 1, 8, 128>}]} {
    %c0_i32 = arith.constant 0 : i32
    %0 = arith.cmpi eq, %arg1, %c0_i32 : i32
    %1 = arith.extui %0 : i1 to i32
    %c0_i32_0 = arith.constant 0 : i32
    %2 = arith.cmpi ne, %1, %c0_i32_0 : i32
    scf.if %2 {
      %cst_12 = arith.constant 0.000000e+00 : f32
      %33 = vector.broadcast %cst_12 : f32 to vector<1x8x128xf32>
      %c0_13 = arith.constant 0 : index
      %c0_14 = arith.constant 0 : index
      %c0_15 = arith.constant 0 : index
      %34 = vector.load %arg5[%c0_13, %c0_14, %c0_15] : memref<1x8x128xf32, #tpu.memory_space<vmem>>, vector<1x8x128xf32>
      tpu.vector_store %arg5[%c0_13, %c0_14, %c0_15], %33 {strides = array<i32>} : memref<1x8x128xf32, #tpu.memory_space<vmem>>, vector<1x8x128xf32>,
    } else {
    }
    %c0 = arith.constant 0 : index
    %c0_1 = arith.constant 0 : index
    %3 = vector.load %arg2[%c0, %c0_1] : memref<8x128xf32, #tpu.memory_space<vmem>>, vector<8x128xf32>
    %c0_2 = arith.constant 0 : index
    %c0_3 = arith.constant 0 : index
    %4 = vector.load %arg3[%c0_2, %c0_3] : memref<8x128xf32, #tpu.memory_space<vmem>>, vector<8x128xf32>
    %c0_4 = arith.constant 0 : index
    %c0_5 = arith.constant 0 : index
    %5 = vector.load %arg4[%c0_4, %c0_5] : memref<8x1xf32, #tpu.memory_space<vmem>>, vector<8x1xf32>
    %6 = arith.subf %3, %4 : vector<8x128xf32>
    %cst = arith.constant 9.99999997E-7 : f32
    %7 = vector.broadcast %cst : f32 to vector<8x128xf32>
    %8 = arith.addf %6, %7 : vector<8x128xf32>
    %9 = arith.mulf %8, %8 : vector<8x128xf32>
    %cst_6 = arith.constant dense<0.000000e+00> : vector<8xf32>
    %10 = vector.multi_reduction <add>, %9, %cst_6 [1] : vector<8x128xf32> to vector<8xf32>
    %11 = vector.shape_cast %10 : vector<8xf32> to vector<8x1xf32>
    %12 = math.sqrt %11 : vector<8x1xf32>
    %cst_7 = arith.constant 5.000000e+00 : f32
    %13 = vector.broadcast %cst_7 : f32 to vector<8x1xf32>
    %14 = arith.subf %13, %12 : vector<8x1xf32>
    %cst_8 = arith.constant 0.000000e+00 : f32
    %15 = vector.broadcast %cst_8 : f32 to vector<8x1xf32>
    %16 = arith.maximumf %14, %15 : vector<8x1xf32>
    %cst_9 = arith.constant 1.000000e+00 : f32
    %17 = vector.broadcast %cst_9 : f32 to vector<8x1xf32>
    %18 = arith.subf %17, %5 : vector<8x1xf32>
    %19 = arith.mulf %18, %11 : vector<8x1xf32>
    %20 = arith.mulf %5, %16 : vector<8x1xf32>
    %21 = arith.mulf %20, %16 : vector<8x1xf32>
    %22 = arith.addf %19, %21 : vector<8x1xf32>
    %c2_i32 = arith.constant 2 : i32
    %23 = arith.muli %arg0, %c2_i32 : i32
    %24 = arith.addi %23, %arg1 : i32
    %c1_i32 = arith.constant 1 : i32
    %25 = arith.addi %24, %c1_i32 : i32
    %c8_i32 = arith.constant 8 : i32
    %26 = arith.muli %25, %c8_i32 : i32
    %c24_i32 = arith.constant 24 : i32
    %27 = arith.cmpi sgt, %26, %c24_i32 : i32
    %true = arith.constant true
    %28 = arith.xori %27, %true : i1
    %29 = arith.extui %28 : i1 to i32
    %c0_i32_10 = arith.constant 0 : i32
    %30 = arith.cmpi ne, %29, %c0_i32_10 : i32
    scf.if %30 {
      %c0_12 = arith.constant 0 : index
      %c0_13 = arith.constant 0 : index
      %c0_14 = arith.constant 0 : index
      %33 = vector.load %arg5[%c0_12, %c0_13, %c0_14] : memref<1x8x128xf32, #tpu.memory_space<vmem>>, vector<1x8x128xf32>
      %34 = vector.shape_cast %22 : vector<8x1xf32> to vector<1x8x1xf32>
      %cst_15 = arith.constant dense<0.000000e+00> : vector<1xf32>
      %35 = vector.multi_reduction <add>, %34, %cst_15 [1, 2] : vector<1x8x1xf32> to vector<1xf32>
      %36 = vector.shape_cast %35 : vector<1xf32> to vector<1x1x1xf32>
      %37 = vector.extract %36[0, 0, 0] : f32 from vector<1x1x1xf32>
      %38 = vector.broadcast %37 : f32 to vector<1x8x128xf32>
      %39 = arith.addf %33, %38 : vector<1x8x128xf32>
      %c0_16 = arith.constant 0 : index
      %c0_17 = arith.constant 0 : index
      %c0_18 = arith.constant 0 : index
      %40 = vector.load %arg5[%c0_16, %c0_17, %c0_18] : memref<1x8x128xf32, #tpu.memory_space<vmem>>, vector<1x8x128xf32>
      tpu.vector_store %arg5[%c0_16, %c0_17, %c0_18], %39 {strides = array<i32>} : memref<1x8x128xf32, #tpu.memory_space<vmem>>, vector<1x8x128xf32>,
    } else {
    }
    %31 = arith.extui %27 : i1 to i32
    %c0_i32_11 = arith.constant 0 : i32
    %32 = arith.cmpi ne, %31, %c0_i32_11 : i32
    scf.if %32 {
      %c8_i32_12 = arith.constant 8 : i32
      %33 = arith.muli %24, %c8_i32_12 : i32
      %34 = tpu.iota {dimensions = array<i32: 0>} : vector<8x1xi32>
      %35 = vector.broadcast %33 : i32 to vector<8x1xi32>
      %36 = arith.addi %35, %34 : vector<8x1xi32>
      %c24_i32_13 = arith.constant 24 : i32
      %37 = vector.broadcast %c24_i32_13 : i32 to vector<8x1xi32>
      %38 = arith.cmpi slt, %36, %37 : vector<8x1xi32>
      %cst_14 = arith.constant 0.000000e+00 : f32
      %39 = vector.broadcast %cst_14 : f32 to vector<8x1xf32>
      %40 = arith.select %38, %22, %39 : vector<8x1xi1>, vector<8x1xf32>
      %c0_15 = arith.constant 0 : index
      %c0_16 = arith.constant 0 : index
      %c0_17 = arith.constant 0 : index
      %41 = vector.load %arg5[%c0_15, %c0_16, %c0_17] : memref<1x8x128xf32, #tpu.memory_space<vmem>>, vector<1x8x128xf32>
      %42 = vector.shape_cast %40 : vector<8x1xf32> to vector<1x8x1xf32>
      %cst_18 = arith.constant dense<0.000000e+00> : vector<1xf32>
      %43 = vector.multi_reduction <add>, %42, %cst_18 [1, 2] : vector<1x8x1xf32> to vector<1xf32>
      %44 = vector.shape_cast %43 : vector<1xf32> to vector<1x1x1xf32>
      %45 = vector.extract %44[0, 0, 0] : f32 from vector<1x1x1xf32>
      %46 = vector.broadcast %45 : f32 to vector<1x8x128xf32>
      %47 = arith.addf %41, %46 : vector<1x8x128xf32>
      %c0_19 = arith.constant 0 : index
      %c0_20 = arith.constant 0 : index
      %c0_21 = arith.constant 0 : index
      %48 = vector.load %arg5[%c0_19, %c0_20, %c0_21] : memref<1x8x128xf32, #tpu.memory_space<vmem>>, vector<1x8x128xf32>
      tpu.vector_store %arg5[%c0_19, %c0_20, %c0_21], %47 {strides = array<i32>} : memref<1x8x128xf32, #tpu.memory_space<vmem>>, vector<1x8x128xf32>,
    } else {
    }
    return
  }
  func.func @transform_0(%arg0: i32, %arg1: i32) -> (i32, i32) {
    %c2_i32 = arith.constant 2 : i32
    %0 = arith.muli %arg0, %c2_i32 : i32
    %1 = arith.addi %0, %arg1 : i32
    %c2_i32_0 = arith.constant 2 : i32
    %2 = arith.minsi %1, %c2_i32_0 : i32
    %c0_i32 = arith.constant 0 : i32
    %c0_i32_1 = arith.constant 0 : i32
    return %2, %c0_i32 : i32, i32
  }
  func.func @transform_1(%arg0: i32, %arg1: i32) -> (i32, i32) {
    %c2_i32 = arith.constant 2 : i32
    %0 = arith.muli %arg0, %c2_i32 : i32
    %1 = arith.addi %0, %arg1 : i32
    %c2_i32_0 = arith.constant 2 : i32
    %2 = arith.minsi %1, %c2_i32_0 : i32
    %c0_i32 = arith.constant 0 : i32
    %c0_i32_1 = arith.constant 0 : i32
    return %2, %c0_i32 : i32, i32
  }
  func.func @transform_2(%arg0: i32, %arg1: i32) -> (i32, i32) {
    %c2_i32 = arith.constant 2 : i32
    %0 = arith.muli %arg0, %c2_i32 : i32
    %1 = arith.addi %0, %arg1 : i32
    %c2_i32_0 = arith.constant 2 : i32
    %2 = arith.minsi %1, %c2_i32_0 : i32
    %c0_i32 = arith.constant 0 : i32
    %c0_i32_1 = arith.constant 0 : i32
    return %2, %c0_i32 : i32, i32
  }
  func.func @transform_3(%arg0: i32, %arg1: i32) -> (i32, i32, i32) {
    %c0_i32 = arith.constant 0 : i32
    %c0_i32_0 = arith.constant 0 : i32
    %c0_i32_1 = arith.constant 0 : i32
    return %arg0, %c0_i32, %c0_i32_0 : i32, i32, i32
  }
}

</mosaic_0001>

<bundles_post_ra>
// kernel: tpu_custom_call.1
= control target key start
LH: loop header
LB: loop body
LE: loop exit
PB: predicated region body
PF: predicated region fallthrough
CT: control target
= control target key end

     0   :  { %s1078_s0 = inlined_call_operand.vmem [shape: f32[24,128], index: 0, kind: input, shape index: {}]   ;;  %s1079_s1 = inlined_call_operand.hbm [shape: f32[24,128], index: 1, kind: input, shape index: {}]   ;;  %s1080_s2 = inlined_call_operand.vmem [shape: f32[24,1], index: 2, kind: input, shape index: {}]   ;;  %s1081_s3 = inlined_call_operand.hbm [shape: f32[2,8,128], index: 3, kind: output, shape index: {}]  }
   0x1   :  { %1085 = sst [smem:[#allocation10_spill]] %s1079_s1 }
   0x2   :  { %8 = vsyncpa [#allocation3], 0 }
   0x3   :  { %10 = vsyncpa [#allocation3 + $0x1], 0 }
   0x4   :  { %11 = vsyncpa [#allocation4], 0 }
   0x5   :  { %13 = vsyncpa [#allocation4 + $0x1], 0  ;;  %s823_s12 = smov 0   ;;  %s825_s13 = smov 0  }
   0x6   :  { %s827_s14 = smov 0   ;;  %s829_s15 = smov 0  }
   0x7   :  { %s831_s16 = smov 0   ;;  %s833_s17 = smov 0  }
   0x8   :  { %s835_s18 = smov 0   ;;  %s837_s19 = smov 0  }
   0x9   :  { %s839_s20 = smov 0   ;;  %s841_s21 = smov 0  }
   0xa   :  { %s843_s22 = smov 0  }
   0xb LB: > { %s499_s23 = sadd.s32 4294967295, %s798_s22   ;;  %s500_s24 = sadd.s32 4294967294, %s798_s22   ;;  %s798_s22 = sphi %s843_s22, %s19_s22   ;;  %s794_s21 = sphi %s841_s21, %s1109_s21   ;;  %s790_s20 = sphi %s839_s20, %s1108_s20   ;;  %s786_s19 = sphi %s837_s19, %s1107_s19   ;;  %s782_s18 = sphi %s835_s18, %s1106_s18   ;;  %s778_s17 = sphi %s833_s17, %s1105_s17   ;;  %s774_s16 = sphi %s831_s16, %s1104_s16   ;;  %s770_s15 = sphi %s829_s15, %s1103_s15   ;;  %s766_s14 = sphi %s827_s14, %s1102_s14   ;;  %s762_s13 = sphi %s825_s13, %s1101_s13   ;;  %s758_s12 = sphi %s823_s12, %s1100_s12  }
   0xc   : > { %s28_s25 = sadd.s32 1, %s790_s20  ;;  %s31_s26 = sadd.s32 1, %s794_s21 }
   0xd   : > { %p29_p0 = scmp.ge.s32.totalorder %s28_s25, 2  ;;  %s503_s27 = sshll.u32 %s794_s21, 1 }
   0xe   : > { %s70_s28 = sadd.s32 %s790_s20, %s503_s27  ;;  %s80_s29 = sadd.s32 1, %s778_s17 }
   0xf   : > { %s1111_s25 = smov (%p29_p0, %s28_s25), 0  ;;  %s1113_s26 = smov (!%p29_p0, %s31_s26), %s794_s21 }
  0x10   : > { %1086 = sst [smem:[#allocation8_spill]] %s1111_s25  ;;  %p71_p1 = scmp.lt.s32.totalorder %s70_s28, 2 }
  0x11   : > { %p87_p2 = scmp.ne.s32.totalorder %s778_s17, %s774_s16  ;;  %p33_p3 = scmp.ge.s32.totalorder %s1113_s26, 2 }
  0x12   : > { %p88_p4 = scmp.eq.s32.totalorder %s798_s22, 0  ;;  %s1115_s28 = smov (!%p71_p1, %s70_s28), 2 }
  0x13   : > { %s1117_s26 = smov (%p33_p3, %s1113_s26), 0  ;;  %p93_p6 = scmp.ne.s32.totalorder %s774_s16, %s770_s15 }
  0x14   : > { %1087 = sst [smem:[#allocation9_spill]] %s1117_s26  ;;  %p893_p5 = por %p88_p4, %p87_p2 }
  0x15   : > { %s504_s4 = sshll.u32 %s1117_s26, 1  ;;  %p94_p7 = scmp.eq.s32.totalorder %s499_s23, 0 }
  0x16   : > { %s74_s5 = sadd.s32 %s504_s4, %s1111_s25  ;;  %s137_s6 = ssub.s32 %s794_s21, %s1117_s26 }
  0x17   : > { %p75_p8 = scmp.lt.s32.totalorder %s74_s5, 2  ;;  %p905_p9 = por %p94_p7, %p93_p6 }
  0x18   : > { %p138_p10 = scmp.eq.s32.totalorder %s137_s6, 0  ;;  %s140_s8 = sadd.s32 1, %s766_s14 }
  0x19   : > { %s1119_s5 = smov (!%p75_p8, %s74_s5), 2  ;;  %p150_p11 = scmp.ne.s32.totalorder %s766_s14, %s762_s13 }
  0x1a   : > { %s911_s9 = scalar_select %p138_p10, %s766_s14, %s140_s8  }
  0x1b   : > { %s77_s10 = ssub.s32 %s1115_s28, %s1119_s5  ;;  %p151_p13 = scmp.eq.s32.totalorder %s499_s23, 3 }
  0x1c   : > { %p78_p12 = scmp.eq.s32.totalorder %s77_s10, 0  ;;  %p156_p0 = scmp.ne.s32.totalorder %s762_s13, %s758_s12 }
  0x1d   : > { %p157_p1 = scmp.eq.s32.totalorder %s500_s24, 3  ;;  %p924_p2 = por %p151_p13, %p150_p11 }
  0x1e   : > { %s922_s11 = scalar_select %p78_p12, %s778_s17, %s80_s29  }
  0x1f   : > { %s1090_s15 = scalar_select %p924_p2, 1, 0 }
  0x20   : > { %p928_p3 = por %p157_p1, %p156_p0  ;;  %p553_p4 = scmp.lt.s32.totalorder %s798_s22, 4 }
  0x21   : > { %s192_s4 = sand.u32 1, %s778_s17   ;;  %s511_s5 = sshll.u32 %s1115_s28, 7 }
  0x22   : > { %s1091_s27 = scalar_select %p928_p3, 1, 0 }
  0x23   : > { %s509_s6 = sshll.u32 %s192_s4, 3  ;;  %s1092_s1 = sld [smem:[#allocation10_spill]] }
  0x24   : > { %s196_s24 = scalar_lea.vmem [#allocation2], %s509_s6  ;;  %p941_p6 = pnand %p553_p4, %p893_p5 }
  0x25   : > { %s207_s29 = sshll.u32 %s196_s24, 4  ;;  %s193_s28 = scalar_lea.sflag [#allocation3], %s192_s4  ;;  %s945_s29 = int_to_ptr.vmem [resolvable:$true] %s207_s29 }
  0x26   : > { %p648_p11 = pneg %p941_p6 }
  0x29   : > { %s937_s10 = scalar_lea.hbm %s1092_s1, %s511_s5  ;;  %s651_s8 = scalar_lea.hbm %s1092_s1, 384 }
  0x2a   : > { %s646_s5 = scalar_lea.hbm %s937_s10, 128  ;;  %p652_p5 = scmp.lt.u32.totalorder %s937_s10, %s1092_s1 }
  0x2b   : > { %p647_p10 = scmp.ne.s32.totalorder %s937_s10, %s646_s5  ;;  %p653_p0 = scmp.lt.u32.totalorder %s651_s8, %s646_s5 }
  0x2c   : > { %p655_p4 = scmp.lt.u32.totalorder %s646_s5, %s937_s10 }
  0x2d   : > { %p649_p12 = pnand %p648_p11, %p647_p10  ;;  %p654_p1 = por %p653_p0, %p652_p5 }
  0x2f   : > { %p650_p13 = pneg %p649_p12  ;;  %p656_p7 = por %p655_p4, %p654_p1 }
  0x31   : > { %p657_p8 = pnand %p656_p7, %p650_p13 }
  0x33   : > { %660 = shalt.err (!%p657_p8)
}
  0x34   : > { %s661_s4 = scalar_lea.vmem %s945_s29, 128  ;;  %s800_s30 = smov [#allocation2]  }
  0x35   : > { %p662_p10 = scmp.ne.s32.totalorder %s945_s29, %s661_s4  ;;  %s666_s6 = sshll.u32 %s800_s30, 4  ;;  %s667_s6 = int_to_ptr.vmem [resolvable:$false] %s666_s6 }
  0x36   : > { %s668_s23 = scalar_lea.vmem %s667_s6, 256  ;;  %p669_p2 = scmp.lt.s32.totalorder %s945_s29, %s667_s6 }
  0x37   : > { %p664_p12 = pnand %p662_p10, %p648_p11  ;;  %p670_p5 = scmp.lt.s32.totalorder %s668_s23, %s661_s4 }
  0x39   : > { %p665_p3 = pneg %p664_p12  ;;  %p671_p0 = por %p670_p5, %p669_p2 }
  0x3b   : > { %p672_p1 = pnand %p671_p0, %p665_p3 }
  0x3d   : > { %675 = shalt.err (!%p672_p1)
}
  0x3e   : > { %548 = dma.hbm_to_vmem [thread:$0]  (!%p941_p6), %s937_s10, 128, %s945_s29, %s193_s28  }
  0x3f   : > { %p1094_p7 = scmp.lt.s32.totalorder %s798_s22, 5  ;;  %p1095_p8 = scmp.ge.s32.totalorder %s798_s22, 1 }
  0x41   : > { %p228_p11 = pnand %p1095_p8, %p1094_p7 }
  0x42   : > { %s233_s5 = sand.u32 (!%p228_p11), 1, %s774_s16  }
  0x43   : > { %231 = sbr.rel (%p228_p11) target bundleno = 714 (0x2ca), region = 32  ;;  %s513_s8 = sshll.u32 (!%p228_p11), %s233_s5, 3 }
  0x44   : > { %s234_s24 = scalar_lea.sflag (!%p228_p11), [#allocation3], %s233_s5  ;;  %s237_s4 = scalar_lea.vmem (!%p228_p11), [#allocation2], %s513_s8 }
  0x4a   : > { %749 = dma.done.wait (%p905_p9), %s234_s24, 128  }
  0x4b   : > { %751 = vsyncadd (%p905_p9), %s234_s24, 4294967168  ;;  %s273_s26 = sand.u32 1, %s762_s13   ;;  %s515_s10 = sshll.u32 %s786_s19, 1 }
  0x4c   : > { %s514_s29 = sshll.u32 %s273_s26, 3  ;;  %s988_s28 = sadd.s32 %s782_s18, %s515_s10 }
  0x4d   : > { %p278_p2 = scmp.lt.s32.totalorder %s988_s28, 2  ;;  %s998_s25 = scalar_lea.vmem [#allocation5], %s514_s29 }
  0x4e   : > { %p525_p9 = scmp.ne.s32.totalorder %s782_s18, 0 }
  0x4f   : > { %s279_s30 = scalar_select %p278_p2, %s988_s28, 2 }
  0x50   : > { %307 = sbr.rel (%p525_p9) target bundleno = 87 (0x57), region = 40  ;;  %v801_v0 = vmov (!%p525_p9), 0.0  }
  0x51   : > { %s1121_s30 = smov (!%p278_p2, %s279_s30), 2  ;;  %308 = vst [vmem:[%s998_s25] sm:$0xff] (!%p525_p9), %v801_v0 }
  0x52   : > { %s519_s6 = sshll.u32 %s1121_s30, 3 }
  0x53   : > { %s283_s7 = scalar_lea.vmem %s1078_s0, %s519_s6  ;;  %s299_s1 = scalar_lea.vmem %s1080_s2, %s519_s6 }
  0x57 PF: > { %v309_v1 = vld [vmem:[%s283_s7] sm:$0xff]  ;;  %s535_s10 = sshll.u32 %s988_s28, 3 }
  0x58   : > { %v310_v2 = vld [vmem:[%s237_s4] sm:$0xff]  ;;  %s1005_s30 = sadd.s32 8, %s535_s10 }
  0x59   : > { %v312_v3 = vsub.f32 %v309_v1, %v310_v2  ;;  %v311_v11 = vld [vmem:[%s299_s1] sm:$0xff]  ;;  %p528_p3 = scmp.gt.s32.totalorder %s1005_s30, 24 }
  0x5a   : > { %v326_v15 = vsub.f32 1.0, %v311_v11  ;;  %vm341_vm2 = vcmask (!%p528_p3), 7168   ;;  %v340_v28 = vld [vmem:[%s998_s25] sm:$0xff] (!%p528_p3) }
  0x5b   : > { %v313_v4 = vadd.f32 1e-06, %v312_v3 }
  0x5d   : > { %v314_v5 = vmul.f32 %v313_v4, %v313_v4 }
  0x5f   : > { %315 = vadd.xlane.f32.xlu0 %v314_v5 }
  0xec   : > { %v316_v6 = vpop.xlane.xlu0 %315 }
  0xed   : > { %644 = vrsqrt.f32 %v316_v6  ;;  %vm319_vm0 = vcmp.eq.f32.partialorder %v316_v6, inf  ;;  %v322_v9 = vand.u32 2147483648, %v316_v6  ;;  %vm321_vm1 = vcmp.eq.f32.partialorder %v316_v6, 0.0 }
  0xee   : > { %v327_v17 = vmul.f32 %v326_v15, %v316_v6 }
  0xf7   : > { %v645_v7 = vpop.eup %644 }
  0xf8   : > { %v318_v8 = vmul.f32 %v645_v7, %v316_v6 }
  0xfa   : > { %v320_v10 = vsel %vm319_vm0, %v316_v6, %v318_v8 }
  0xfb   : > { %v323_v12 = vsel %vm321_vm1, %v322_v9, %v320_v10 }
  0xfc   : > { %v324_v13 = vsub.f32 5.0, %v323_v12 }
  0xfe   : > { %v325_v14 = vmax.f32 %v324_v13, 0.0  ;;  %339 = sbr.rel (%p528_p3) target bundleno = 471 (0x1d7), region = 44 }
 0x100   : > { %v328_v16 = vmul.f32 %v325_v14, %v311_v11 }
 0x102   : > { %v329_v18 = vmul.f32 %v328_v16, %v325_v14 }
 0x104   : > { %v330_v19 = vadd.f32 %v329_v18, %v327_v17 }
 0x106   : > { %v342_v20 = vsel %vm341_vm2, %v330_v19, 0.0 }
 0x107   : > { %343 = vadd.xlane.f32.xlu0 %v342_v20 }
 0x194   : > { %v344_v21 = vpop.xlane.xlu0 %343 }
 0x195   : > { %v345_v22 = vrot.slane %v344_v21, 4 }
 0x197   : > { %v346_v23 = vadd.f32 %v345_v22, %v344_v21 }
 0x199   : > { %v347_v24 = vrot.slane %v346_v23, 2 }
 0x19b   : > { %v348_v25 = vadd.f32 %v347_v24, %v346_v23 }
 0x19d   : > { %v349_v26 = vrot.slane %v348_v25, 1 }
 0x19f   : > { %v350_v27 = vadd.f32 %v349_v26, %v348_v25 }
 0x1a1   : > { %537 = vpush %v350_v27 }
 0x1d2   : > { %s538_s1 = spop %537 }
 0x1d3   : > { %v352_v29 = vstv %s538_s1 }
 0x1d4   : > { %v353_v30 = vadd.f32 %v352_v29, %v340_v28 }
 0x1d6   : > { %354 = vst [vmem:[%s998_s25] sm:$0xff] %v353_v30 }
 0x1d7 PF: > { %p529_p6 = scmp.le.s32.totalorder %s1005_s30, 24 }
 0x1d8   : > { %v359_v31 = vlaneseq (!%p529_p6)  ;;  %v361_v32 = vstv (!%p529_p6), %s535_s10  ;;  %vm366_vm3 = vcmask (!%p529_p6), 7168  }
 0x1d9   : > { %357 = sbr.rel (%p529_p6) target bundleno = 689 (0x2b1), region = 48 }
 0x1da   : > { %v360_v33 = vshrl.u32 (!%p529_p6), %v359_v31, 7 }
 0x1dc   : > { %v362_v34 = vadd.s32 (!%p529_p6), %v361_v32, %v360_v33 }
 0x1dd   : > { %v365_v44 = vld [vmem:[%s998_s25] sm:$0xff] (!%p529_p6) }
 0x1de   : > { %vm363_vm4 = vcmp.lt.s32.totalorder (!%p529_p6), %v362_v34, 24 }
 0x1df   : > { %v364_v35 = vsel (!%p529_p6), %vm363_vm4, %v330_v19, 0.0 }
 0x1e0   : > { %v367_v36 = vsel %vm366_vm3, %v364_v35, 0.0 }
 0x1e1   : > { %368 = vadd.xlane.f32.xlu0 %v367_v36 }
 0x26e   : > { %v369_v37 = vpop.xlane.xlu0 %368 }
 0x26f   : > { %v370_v38 = vrot.slane %v369_v37, 4 }
 0x271   : > { %v371_v39 = vadd.f32 %v370_v38, %v369_v37 }
 0x273   : > { %v372_v40 = vrot.slane %v371_v39, 2 }
 0x275   : > { %v373_v41 = vadd.f32 %v372_v40, %v371_v39 }
 0x277   : > { %v374_v42 = vrot.slane %v373_v41, 1 }
 0x279   : > { %v375_v43 = vadd.f32 %v374_v42, %v373_v41 }
 0x27b   : > { %539 = vpush %v375_v43 }
 0x2ac   : > { %s540_s18 = spop %539 }
 0x2ad   : > { %v377_v45 = vstv %s540_s18 }
 0x2ae   : > { %v378_v46 = vadd.f32 %v377_v45, %v365_v44 }
 0x2b0   : > { %379 = vst [vmem:[%s998_s25] sm:$0xff] %v378_v46 }
 0x2b1 PF: > { %s532_s4 = sshll.u32 %s786_s19, 7  ;;  %s394_s23 = sshll.u32 %s998_s25, 4  ;;  %s395_s23 = int_to_ptr.vmem [resolvable:$true] %s394_s23 }
 0x2b2   : > { %s1019_s6 = scalar_lea.hbm %s1081_s3, %s532_s4  ;;  %s381_s5 = scalar_lea.sflag [#allocation4], %s273_s26 }
 0x2b3   : > { %s676_s7 = scalar_lea.vmem %s395_s23, 128  ;;  %p1096_p4 = scmp.ne.s32.totalorder %s1090_s15, 0 }
 0x2b4   : > { %p677_p13 = scmp.ne.s32.totalorder %s395_s23, %s676_s7  ;;  %s802_s8 = smov [#allocation5]  }
 0x2b5   : > { %s680_s24 = sshll.u32 %s802_s8, 4  ;;  %s681_s24 = int_to_ptr.vmem [resolvable:$false] %s680_s24 }
 0x2b6   : > { %p678_p10 = pnand %p677_p13, %p1096_p4  ;;  %s682_s10 = scalar_lea.vmem %s681_s24, 256 }
 0x2b7   : > { %p683_p5 = scmp.lt.s32.totalorder %s395_s23, %s681_s24  ;;  %p684_p0 = scmp.lt.s32.totalorder %s682_s10, %s676_s7 }
 0x2b8   : > { %p679_p12 = pneg %p678_p10 }
 0x2b9   : > { %p685_p1 = por %p684_p0, %p683_p5 }
 0x2bb   : > { %p686_p7 = pnand %p685_p1, %p679_p12 }
 0x2bd   : > { %689 = shalt.err (!%p686_p7)
}
 0x2be   : > { %s690_s19 = scalar_lea.hbm %s1019_s6, 128  ;;  %s694_s30 = scalar_lea.hbm %s1081_s3, 256 }
 0x2bf   : > { %p691_p8 = scmp.ne.s32.totalorder %s1019_s6, %s690_s19  ;;  %p695_p9 = scmp.lt.u32.totalorder %s1019_s6, %s1081_s3 }
 0x2c0   : > { %p696_p3 = scmp.lt.u32.totalorder %s694_s30, %s690_s19  ;;  %p698_p13 = scmp.lt.u32.totalorder %s690_s19, %s1019_s6 }
 0x2c1   : > { %p692_p11 = pnand %p691_p8, %p1096_p4 }
 0x2c2   : > { %p697_p6 = por %p696_p3, %p695_p9 }
 0x2c3   : > { %p693_p2 = pneg %p692_p11 }
 0x2c4   : > { %p699_p10 = por %p698_p13, %p697_p6 }
 0x2c6   : > { %p700_p12 = pnand %p699_p10, %p693_p2 }
 0x2c8   : > { %703 = shalt.err (!%p700_p12)
}
 0x2c9   : > { %543 = dma.vmem_to_hbm [thread:$0]  (%p1096_p4), %s395_s23, 128, %s1019_s6, %s381_s5  }
 0x2ca PF: > { %p554_p5 = scmp.ge.s32.totalorder %s798_s22, 2  ;;  %s406_s4 = sand.u32 1, %s758_s12  }
 0x2cb   : > { %p1097_p0 = scmp.ne.s32.totalorder %s1091_s27, 0  ;;  %s407_s29 = scalar_lea.sflag [#allocation4], %s406_s4 }
 0x2cd   : > { %p550_p1 = pnand %p554_p5, %p1097_p0 }
 0x2cf   : > { %753 = dma.done.wait (!%p550_p1), %s407_s29, 128  }
 0x2d0   : > { %755 = vsyncadd (!%p550_p1), %s407_s29, 4294967168  ;;  %s19_s22 = sadd.s32 1, %s798_s22   ;;  %s1098_s28 = sld [smem:[#allocation8_spill]] }
 0x2d1   : > { %p16_p7 = scmp.ge.s32.totalorder %s19_s22, 6   ;;  %s1099_s6 = sld [smem:[#allocation9_spill]] }
 0x2d2   : > { %s1100_s12 = smov %s762_s13  ;;  %s1101_s13 = smov %s766_s14 }
 0x2d3   : > { %s1102_s14 = smov %s911_s9  ;;  %s1103_s15 = smov %s774_s16 }
 0x2d4   : > { %s1104_s16 = smov %s778_s17  ;;  %s1105_s17 = smov %s922_s11 }
 0x2d5   : > { %s1106_s18 = smov %s790_s20  ;;  %s1107_s19 = smov %s794_s21 }
 0x2d6   : > { %s1108_s20 = smov %s1098_s28  ;;  %18 = sbr.rel (!%p16_p7) target bundleno = 11 (0xb), region = 95 }
 0x2d7   : > { %s1109_s21 = smov %s1099_s6 }
 0x2dd   :  { %412 = vsyncpa [#allocation3], 1 }
 0x2de   :  { %414 = vsyncpa [#allocation3 + $0x1], 1 }
 0x2df   :  { %415 = vsyncpa [#allocation4], 1 }
 0x2e0   :  { %417 = vsyncpa [#allocation4 + $0x1], 1 }

</bundles_post_ra>
